<compile_context>
chip_gen: v7x
topology: tpu7x:2x2x1
jax: 0.10.0
libtpu: 0.0.40
codegen_flags: <defaults>
</compile_context>

<pallas_src>
import jax
import jax.numpy as jnp
from jax import lax
from jax.experimental import pallas as pl
from jax.experimental.pallas import tpu as pltpu

LANES = 128
SUBLANES = 8


def _round_up(v, m):
    return ((v + m - 1) // m) * m


def _make_kernel(*, weighted, margin, tile_rows, chunk, rows_valid_last,
                 gate_mask_to_last, finalize_scale):
    """Build the kernel body.  All parameters are static Python values."""
    n_chunks = tile_rows // chunk
    unroll = min(8, n_chunks)

    def _elementwise(xb, wb):
        t = jnp.clip(xb.astype(jnp.float32), 0.0001, 0.9999)
        if margin != 0.0:            # statically skip the add when margin == 0
            t = t + jnp.float32(margin)
        t = jnp.log(t)
        if weighted:
            t = t * wb.astype(jnp.float32)
        return t

    def _tile_sum(x_ref, w_ref, masked):
        def body(c, acc):
            r0 = pl.multiple_of(c * chunk, chunk)
            xb = x_ref[pl.ds(r0, chunk), :]
            wb = w_ref[pl.ds(r0, chunk), :] if weighted else None
            t = _elementwise(xb, wb)
            if masked:
                # Tile-relative row index (<= tile_rows <= 8192): no int32
                # overflow even for multi-billion-element tensors.
                row = c * chunk + lax.broadcasted_iota(
                    jnp.int32, (chunk, LANES), 0)
                # True select (NaN-safe): garbage in the padded region of a
                # partial block never reaches the sum.
                t = jnp.where(row < rows_valid_last, t, 0.0)
            return acc + t.reshape(chunk // SUBLANES, SUBLANES, LANES).sum(axis=0)

        return lax.fori_loop(0, n_chunks, body,
                             jnp.zeros((SUBLANES, LANES), jnp.float32),
                             unroll=unroll)

    def _write(out_ref, partial):
        if finalize_scale is not None:
            # Single-tile fast path: finish the reduction in-kernel and write
            # the already-scaled scalar loss to SMEM.
            out_ref[0, 0] = jnp.sum(partial) * jnp.float32(finalize_scale)
        else:
            out_ref[...] = partial

    def _body(x_ref, w_ref, out_ref):
        if rows_valid_last is None:
            _write(out_ref, _tile_sum(x_ref, w_ref, masked=False))
        elif not gate_mask_to_last:
            # Single (partial) tile: always mask.
            _write(out_ref, _tile_sum(x_ref, w_ref, masked=True))
        else:
            is_last = pl.program_id(0) == pl.num_programs(0) - 1

            @pl.when(jnp.logical_not(is_last))
            def _():
                _write(out_ref, _tile_sum(x_ref, w_ref, masked=False))

            @pl.when(is_last)
            def _():
                _write(out_ref, _tile_sum(x_ref, w_ref, masked=True))

    if weighted:
        def kernel(x_ref, w_ref, out_ref):
            _body(x_ref, w_ref, out_ref)
    else:
        def kernel(x_ref, out_ref):
            _body(x_ref, None, out_ref)
    return kernel


def simmax_loss(x, weights=1.0, margin=0.0, *, tile_rows=None):
    """Pallas implementation of SimMaxLoss.forward.

    x:       any-shaped float array (NCHW similarity maps in reference usage).
    weights: scalar (default) or array broadcastable against x.
    margin:  static Python float.
    """
    x = jnp.asarray(x)
    n = int(x.size)
    margin = float(margin)
    scalar_w = (jnp.ndim(weights) == 0)
    concrete_w = scalar_w and isinstance(weights, (int, float))

    x_flat = x.reshape(-1)                      # free: contiguous reshape
    n_pref = (n // LANES) * LANES               # 128-aligned prefix -> kernel
    tail = n - n_pref

    if not scalar_w:
        w_arr = jnp.asarray(weights)
        if w_arr.shape != x.shape:
            # TODO(synk): stream compact broadcastable weights (e.g. per-channel)
            # via a small BlockSpec instead of materializing the broadcast.
            w_arr = jnp.broadcast_to(w_arr, x.shape)
        w_flat = w_arr.reshape(-1)

    # ---- tiny (<128 element) tail handled in plain JAX (no padded copy) ----
    tail_sum = jnp.float32(0.0)
    if tail:
        tx = jnp.clip(x_flat[n_pref:].astype(jnp.float32), 0.0001, 0.9999)
        tt = jnp.log(tx + margin)
        if not scalar_w:
            tt = tt * w_flat[n_pref:].astype(jnp.float32)
        tail_sum = jnp.sum(tt, dtype=jnp.float32)

    if n_pref == 0:                              # degenerate tiny input
        total = tail_sum
        if scalar_w:
            total = total * jnp.asarray(weights, jnp.float32)
        return -total / jnp.float32(n)

    n_rows = n_pref // LANES
    slab_x = (x_flat if tail == 0 else x_flat[:n_pref]).reshape(n_rows, LANES)
    operands = [slab_x]
    if not scalar_w:
        slab_w = (w_flat if tail == 0 else w_flat[:n_pref]).reshape(n_rows, LANES)
        operands.append(slab_w)

    # ---- tile-size selection ----
    desired = tile_rows if tile_rows is not None else (8192 if scalar_w else 4096)
    desired = max(SUBLANES, _round_up(int(desired), SUBLANES))
    tr = min(desired, _round_up(n_rows, SUBLANES))
    if n_rows >= 256:
        # Keep both v7x TensorCores busy: at least 2 grid steps for real inputs.
        tr = min(tr, _round_up(pl.cdiv(n_rows, 2), SUBLANES))
    n_tiles = pl.cdiv(n_rows, tr)
    needs_mask = (n_rows % tr) != 0
    rows_valid_last = (n_rows - (n_tiles - 1) * tr) if needs_mask else None
    chunk = next(c for c in (128, 64, 32, 16, 8) if tr % c == 0)

    finalize = (n_tiles == 1 and tail == 0)
    finalize_scale = None
    if finalize:
        finalize_scale = -1.0 / n
        if concrete_w:
            finalize_scale *= float(weights)

    kernel = _make_kernel(
        weighted=not scalar_w, margin=margin, tile_rows=tr, chunk=chunk,
        rows_valid_last=rows_valid_last,
        gate_mask_to_last=(needs_mask and n_tiles > 1),
        finalize_scale=finalize_scale)

    in_specs = [pl.BlockSpec((tr, LANES), lambda i: (i, 0)) for _ in operands]
    if finalize:
        out_shape = jax.ShapeDtypeStruct((1, 1), jnp.float32)
        out_specs = pl.BlockSpec(memory_space=pltpu.MemorySpace.SMEM)
        dim_sem = ("arbitrary",)
    else:
        out_shape = jax.ShapeDtypeStruct((n_tiles, SUBLANES, LANES), jnp.float32)
        out_specs = pl.BlockSpec((None, SUBLANES, LANES), lambda i: (i, 0, 0))
        dim_sem = ("parallel",)

    bytes_in = sum(int(op.size) * op.dtype.itemsize for op in operands)
    bytes_out = 4 if finalize else n_tiles * SUBLANES * LANES * 4
    cost = pl.CostEstimate(flops=5 * n_pref, transcendentals=n_pref,
                           bytes_accessed=bytes_in + bytes_out)

    result = pl.pallas_call(
        kernel,
        out_shape=out_shape,
        grid_spec=pltpu.PrefetchScalarGridSpec(
            num_scalar_prefetch=0,
            grid=(n_tiles,),
            in_specs=in_specs,
            out_specs=out_specs,
        ),
        compiler_params=pltpu.CompilerParams(dimension_semantics=dim_sem),
        cost_estimate=cost,
    )(*operands)

    if finalize:
        loss = result[0, 0]
        if scalar_w and not concrete_w:
            loss = loss * jnp.asarray(weights, jnp.float32)
        return loss

    total = jnp.sum(result, dtype=jnp.float32) + tail_sum
    if scalar_w:
        total = total * jnp.asarray(weights, jnp.float32)
    return -total / jnp.float32(n)


def _reference(x, weights=1.0, margin=0.0):
    xc = jnp.clip(jnp.asarray(x, jnp.float32), 0.0001, 0.9999)
    return -jnp.mean(jnp.log(xc + margin) * weights)


if __name__ == "__main__":
    key = jax.random.PRNGKey(0)

    # SimMaxLoss is applied to similarity maps; small NCHW tensor.
    x = jax.random.uniform(key, (2, 4, 16, 16), dtype=jnp.float32)
    loss = jax.block_until_ready(simmax_loss(x, weights=1.0, margin=0.0))
    ref = _reference(x, 1.0, 0.0)
    assert jnp.allclose(loss, ref, rtol=1e-5, atol=1e-6), (loss, ref)

    # Tensor-weight + unaligned-size (tail + partial-block mask) path.
    k1, k2 = jax.random.split(key)
    x2 = jax.random.uniform(k1, (3, 5, 7, 11), dtype=jnp.float32)
    w2 = jax.random.uniform(k2, (3, 5, 7, 11), dtype=jnp.float32)
    loss2 = jax.block_until_ready(simmax_loss(x2, weights=w2, margin=0.5))
    ref2 = _reference(x2, w2, 0.5)
    assert jnp.allclose(loss2, ref2, rtol=1e-5, atol=1e-6), (loss2, ref2)

    print("KERNEL_OK")
</pallas_src>

<mosaic_0001>
module attributes {stable_mosaic.version = 11 : i64} {
  func.func @kernel(%arg0: i32, %arg1: memref<16x128xf32, #tpu.memory_space<vmem>>, %arg2: memref<1x1xf32, #tpu.memory_space<smem>>) attributes {dimension_semantics = [#tpu.dimension_semantics<arbitrary>], iteration_bounds = array<i64: 1>, scalar_prefetch = 0 : i64, scratch_operands = 0 : i64, tpu.core_type = #tpu.core_type<tc>, window_params = [{transform_indices = @transform_0, window_bounds = array<i64: 16, 128>}, {transform_indices = @transform_1, window_bounds = array<i64: 1, 1>}]} {
    %cst = arith.constant 0.000000e+00 : f32
    %0 = vector.broadcast %cst : f32 to vector<8x128xf32>
    %c0_i32 = arith.constant 0 : i32
    %c16_i32 = arith.constant 16 : i32
    %1 = arith.muli %c0_i32, %c16_i32 : i32
    %2 = tpu.assume_multiple %1, 16 : i32
    %3 = arith.index_cast %2 : i32 to index
    %c0 = arith.constant 0 : index
    %4 = vector.load %arg1[%3, %c0] : memref<16x128xf32, #tpu.memory_space<vmem>>, vector<16x128xf32>
    %cst_0 = arith.constant 9.99999974E-5 : f32
    %cst_1 = arith.constant 0.999899983 : f32
    %5 = vector.broadcast %cst_0 : f32 to vector<16x128xf32>
    %6 = arith.maximumf %5, %4 : vector<16x128xf32>
    %7 = vector.broadcast %cst_1 : f32 to vector<16x128xf32>
    %8 = arith.minimumf %7, %6 : vector<16x128xf32>
    %9 = math.log %8 : vector<16x128xf32>
    %10 = vector.shape_cast %9 : vector<16x128xf32> to vector<2x8x128xf32>
    %cst_2 = arith.constant dense<0.000000e+00> : vector<8x128xf32>
    %11 = vector.multi_reduction <add>, %10, %cst_2 [0] : vector<2x8x128xf32> to vector<8x128xf32>
    %12 = arith.addf %0, %11 : vector<8x128xf32>
    %c1_i32 = arith.constant 1 : i32
    %13 = vector.shape_cast %12 : vector<8x128xf32> to vector<1x8x128xf32>
    %cst_3 = arith.constant dense<0.000000e+00> : vector<1xf32>
    %14 = vector.multi_reduction <add>, %13, %cst_3 [1, 2] : vector<1x8x128xf32> to vector<1xf32>
    %15 = vector.shape_cast %14 : vector<1xf32> to vector<1x1x1xf32>
    %16 = vector.extract %15[0, 0, 0] : f32 from vector<1x1x1xf32>
    %cst_4 = arith.constant -4.8828125E-4 : f32
    %17 = arith.mulf %16, %cst_4 : f32
    %c0_5 = arith.constant 0 : index
    %c0_6 = arith.constant 0 : index
    %18 = memref.load %arg2[%c0_5, %c0_6] : memref<1x1xf32, #tpu.memory_space<smem>>
    memref.store %17, %arg2[%c0_5, %c0_6] : memref<1x1xf32, #tpu.memory_space<smem>>
    return
  }
  func.func @transform_0(%arg0: i32) -> (i32, i32) {
    %c0_i32 = arith.constant 0 : i32
    %c0_i32_0 = arith.constant 0 : i32
    return %arg0, %c0_i32 : i32, i32
  }
  func.func @transform_1(%arg0: i32) -> (i32, i32) {
    %c0_i32 = arith.constant 0 : i32
    %c0_i32_0 = arith.constant 0 : i32
    %c0_i32_1 = arith.constant 0 : i32
    return %c0_i32, %c0_i32_0 : i32, i32
  }
}

</mosaic_0001>

<bundles_post_ra>
// kernel: tpu_custom_call.1
= control target key start
LH: loop header
LB: loop body
LE: loop exit
PB: predicated region body
PF: predicated region fallthrough
CT: control target
= control target key end

     0   :  { %6 = vsyncpa [#allocation3], 0  ;;  %s145_s0 = inlined_call_operand.hbm [shape: f32[16,128], index: 0, kind: input, shape index: {}]   ;;  %s146_s1 = inlined_call_operand.hbm [shape: f32[1,1], index: 1, kind: output, shape index: {}]  }
   0x1   :  { %7 = vsyncpa [#allocation4], 0  ;;  %s107_s6 = smov [#allocation2]   ;;  %s71_s10 = scalar_lea.hbm %s145_s0, 256 }
   0x2   :  { %s13_s7 = sshll.u32 %s107_s6, 4  ;;  %p72_p0 = scmp.ne.s32.totalorder %s145_s0, %s71_s10  ;;  %s14_s7 = int_to_ptr.vmem [resolvable:$true] %s13_s7 }
   0x3   :  { %p75_p1 = scmp.lt.u32.totalorder %s71_s10, %s145_s0 }
   0x5   :  { %p77_p2 = pnand %p75_p1, %p72_p0 }
   0x7   :  { %80 = shalt.err (!%p77_p2)
}
   0x8   :  { %s81_s15 = scalar_lea.vmem %s14_s7, 256  ;;  %p86_p4 = scmp.lt.s32.totalorder %s14_s7, %s14_s7 }
   0x9   :  { %p82_p3 = scmp.ne.s32.totalorder %s14_s7, %s81_s15  ;;  %p87_p5 = scmp.lt.s32.totalorder %s81_s15, %s81_s15 }
   0xb   :  { %p88_p6 = por %p87_p5, %p86_p4 }
   0xd   :  { %p89_p7 = pnand %p88_p6, %p82_p3 }
   0xf   :  { %92 = shalt.err (!%p89_p7)
}
  0x10   :  { %s108_s16 = smov 128   ;;  %s109_s17 = smov 8  }
  0x11   :  { %19 = dma.hbm_to_vmem [thread:$0]  %s145_s0, 256, %s14_s7, [#allocation3], %s108_s16, %s108_s16, %s109_s17  }
  0x12   :  { %103 = dma.done.wait [#allocation3], 256  }
  0x13   :  { %104 = vsyncadd [#allocation3], 4294967040  ;;  %v23_v0 = vld [vmem:[#allocation2] sm:$0xff]  ;;  %v24_v1 = vld [vmem:[#allocation2 + $0x8] sm:$0xff]  ;;  %s93_s23 = scalar_lea.hbm %s146_s1, 16 }
  0x14   :  { %v25_v2 = vmax.f32 %v23_v0, 0.0001  ;;  %v26_v3 = vmax.f32 %v24_v1, 0.0001  ;;  %p94_p8 = scmp.ne.s32.totalorder %s146_s1, %s93_s23  ;;  %p97_p9 = scmp.lt.u32.totalorder %s93_s23, %s146_s1 }
  0x16   :  { %v27_v4 = vmin.f32 %v25_v2, 0.9999  ;;  %v28_v5 = vmin.f32 %v26_v3, 0.9999  ;;  %p99_p10 = pnand %p97_p9, %p94_p8 }
  0x18   :  { %67 = vlog2.f32 %v27_v4 }
  0x19   :  { %69 = vlog2.f32 %v28_v5 }
  0x22   :  { %v68_v6 = vpop.eup %67 }
  0x23   :  { %v70_v7 = vpop.eup %69  ;;  %v30_v8 = vmul.f32 0.6931472, %v68_v6 }
  0x24   :  { %v32_v9 = vmul.f32 0.6931472, %v70_v7 }
  0x26   :  { %v33_v10 = vadd.f32 %v32_v9, %v30_v8 }
  0x28   :  { %35 = vadd.xlane.f32.xlu0 %v33_v10 }
  0xb5   :  { %v36_v11 = vpop.xlane.xlu0 %35 }
  0xb6   :  { %v37_v12 = vrot.slane %v36_v11, 4 }
  0xb8   :  { %v38_v13 = vadd.f32 %v37_v12, %v36_v11 }
  0xba   :  { %v39_v14 = vrot.slane %v38_v13, 2 }
  0xbc   :  { %v40_v15 = vadd.f32 %v39_v14, %v38_v13 }
  0xbe   :  { %v41_v16 = vrot.slane %v40_v15, 1 }
  0xc0   :  { %v42_v17 = vadd.f32 %v41_v16, %v40_v15 }
  0xc2   :  { %61 = vpush %v42_v17 }
  0xf3   :  { %s62_s0 = spop %61 }
  0xf4   :  { %s44_s20 = smul.f32 -0.00048828125, %s62_s0 }
  0xf6   :  { %46 = sst [smem:[#allocation5]] %s44_s20 }
  0xf7   :  { %102 = shalt.err (!%p99_p10)
}
  0xf8   :  { %s110_s28 = smov [#allocation5]  }
  0xf9   :  { %54 = dma.smem_to_hbm %s110_s28, 16, %s146_s1, [#allocation4]  }
  0xfa   :  { %105 = dma.done.wait [#allocation4], 16  }
  0xfb   :  { %106 = vsyncadd [#allocation4], 4294967280 }
  0xfc   :  { %58 = sfence }
  0xfd   :  { %59 = vsyncpa [#allocation3], 1 }
  0xfe   :  { %60 = vsyncpa [#allocation4], 1 }

</bundles_post_ra>
